<compile_context>
chip_gen: v7x
topology: tpu7x:2x2x1
jax: 0.10.0
libtpu: 0.0.40
codegen_flags: <defaults>
</compile_context>

<pallas_src>
import functools

import jax
import jax.numpy as jnp
from jax.experimental import pallas as pl
from jax.experimental.pallas import tpu as pltpu


LANE = 128      # feature dims padded to multiples of this (lane-dense stores)
ROW_PAD = 256   # node dim padded to multiples of this
MAX_TM = 512
MAX_TK = 2048


def _round_up(x, m):
    return ((x + m - 1) // m) * m


def _pick_tile(dim, max_tile):
    """Largest multiple of 128 dividing `dim` that is <= max_tile
    (dim is always a multiple of 128 here)."""
    t = max(128, (min(dim, max_tile) // 128) * 128)
    while dim % t:
        t -= 128
    return t


def _pick_tm(m):
    tm = _pick_tile(m, MAX_TM)
    # Prefer >= 2 row tiles so the two v7x TensorCores actually split work.
    if m > 256 and m // tm < 2:
        tm = _pick_tile(m, m // 2)
    return tm


def _vmem_budget():
    """~75% of physical per-core VMEM; conservative 64 MiB fallback (v7x)."""
    phys = 64 * 1024 * 1024
    try:
        info = pltpu.get_tpu_info()
        phys = int(getattr(info, "vmem_capacity_bytes", phys))
    except Exception:
        pass
    return max(32 * 1024 * 1024, min((phys * 3) // 4, 112 * 1024 * 1024))


# ---------------------------------------------------------------------------
# Fused GCN-layer kernel:  O = relu((A_hat @ FEAT) [@ W] + bias)
#   grid = (M//tm, K//tk), reduction (kk) last, f32 accumulator scratch.
#   FEAT is either the layer input X (fin <= fout, epilogue projects with W)
#   or the pre-projected X @ W (fin > fout, identity epilogue).
# ---------------------------------------------------------------------------
def _fused_gcn_kernel(has_proj, resident_b, tk, *refs):
    if has_proj:
        a_ref, b_ref, w_ref, bias_ref, o_ref, acc_ref = refs
    else:
        a_ref, b_ref, bias_ref, o_ref, acc_ref = refs
        w_ref = None

    kk = pl.program_id(1)

    @pl.when(kk == 0)
    def _():
        acc_ref[...] = jnp.zeros_like(acc_ref)

    if resident_b:
        # Feature matrix is fully resident in VMEM; slice the current K chunk.
        off = pl.multiple_of(kk * tk, 128)
        b_tile = b_ref[pl.ds(off, tk), :]
    else:
        b_tile = b_ref[...]

    acc_ref[...] += jnp.dot(a_ref[...], b_tile,
                            preferred_element_type=jnp.float32)

    @pl.when(kk == pl.num_programs(1) - 1)
    def _():
        acc = acc_ref[...]
        if has_proj:
            out = jnp.dot(acc.astype(jnp.bfloat16), w_ref[...],
                          preferred_element_type=jnp.float32)
        else:
            out = acc
        out = out + bias_ref[...]                      # f32 epilogue (v5e-safe)
        o_ref[...] = jnp.maximum(out, 0.0).astype(o_ref.dtype)


def fused_gcn_layer(a_hat, feat, w_epi, bias, *, out_dtype, vmem_budget):
    """relu((A_hat @ feat) [@ w_epi] + bias) in one pallas_call.
    a_hat:[M,K] bf16, feat:[K,F] bf16, w_epi: None or [F,Fout] bf16,
    bias:[1,Fout] f32. All dims multiples of 128."""
    m, k = a_hat.shape
    k2, f = feat.shape
    assert k == k2
    has_proj = w_epi is not None
    fout = w_epi.shape[1] if has_proj else f
    assert bias.shape == (1, fout)
    out_isz = jnp.dtype(out_dtype).itemsize

    tm = _pick_tm(m)
    tk = _pick_tile(k, MAX_TK)

    def footprint(resident, tm_, tk_):
        b_bytes = (k * f if resident else tk_ * f) * 2 * 2   # double-buffered
        a_bytes = tm_ * tk_ * 2 * 2
        w_bytes = f * fout * 2 * 2 if has_proj else 0
        bias_bytes = fout * 4 * 2
        acc_bytes = tm_ * f * 4
        out_bytes = tm_ * fout * out_isz * 2
        return a_bytes + b_bytes + w_bytes + bias_bytes + acc_bytes + out_bytes

    resident_b = footprint(True, tm, tk) <= vmem_budget
    if not resident_b:
        while footprint(False, tm, tk) > vmem_budget and tk > 512:
            tk = _pick_tile(k, tk // 2)
        while footprint(False, tm, tk) > vmem_budget and tm > 256:
            tm = _pick_tile(m, tm // 2)

    grid = (m // tm, k // tk)

    if resident_b:
        feat_spec = pl.BlockSpec((k, f), lambda i, kk: (0, 0))   # DMA'd once
    else:
        feat_spec = pl.BlockSpec((tk, f), lambda i, kk: (kk, 0))

    in_specs = [pl.BlockSpec((tm, tk), lambda i, kk: (i, kk)), feat_spec]
    inputs = [a_hat, feat]
    if has_proj:
        in_specs.append(pl.BlockSpec((f, fout), lambda i, kk: (0, 0)))
        inputs.append(w_epi)
    in_specs.append(pl.BlockSpec((1, fout), lambda i, kk: (0, 0)))
    inputs.append(bias)

    kernel = functools.partial(_fused_gcn_kernel, has_proj, resident_b, tk)
    return pl.pallas_call(
        kernel,
        out_shape=jax.ShapeDtypeStruct((m, fout), out_dtype),
        grid_spec=pltpu.PrefetchScalarGridSpec(
            num_scalar_prefetch=0,
            grid=grid,
            in_specs=in_specs,
            out_specs=pl.BlockSpec((tm, fout), lambda i, kk: (i, 0)),
            scratch_shapes=[pltpu.VMEM((tm, f), jnp.float32)],
        ),
        compiler_params=pltpu.CompilerParams(
            dimension_semantics=("parallel", "arbitrary"),
            vmem_limit_bytes=vmem_budget,
        ),
    )(*inputs)


# ---------------------------------------------------------------------------
# Plain tiled projection kernel:  H = X @ W  (no bias, no activation).
# Used only when fin > fout so the N^2 contraction runs over the smaller dim.
# ---------------------------------------------------------------------------
def _proj_kernel(x_ref, w_ref, o_ref, acc_ref):
    @pl.when(pl.program_id(1) == 0)
    def _():
        acc_ref[...] = jnp.zeros_like(acc_ref)

    acc_ref[...] += jnp.dot(x_ref[...], w_ref[...],
                            preferred_element_type=jnp.float32)

    @pl.when(pl.program_id(1) == pl.num_programs(1) - 1)
    def _():
        o_ref[...] = acc_ref[...].astype(o_ref.dtype)


def project_features(x, w, *, vmem_budget):
    m, kdim = x.shape
    _, n = w.shape
    tm = _pick_tm(m)
    tk = _pick_tile(kdim, MAX_TK)
    grid = (m // tm, kdim // tk)
    return pl.pallas_call(
        _proj_kernel,
        out_shape=jax.ShapeDtypeStruct((m, n), jnp.bfloat16),
        grid_spec=pltpu.PrefetchScalarGridSpec(
            num_scalar_prefetch=0,
            grid=grid,
            in_specs=[pl.BlockSpec((tm, tk), lambda i, kk: (i, kk)),
                      pl.BlockSpec((tk, n), lambda i, kk: (kk, 0))],
            out_specs=pl.BlockSpec((tm, n), lambda i, kk: (i, 0)),
            scratch_shapes=[pltpu.VMEM((tm, n), jnp.float32)],
        ),
        compiler_params=pltpu.CompilerParams(
            dimension_semantics=("parallel", "arbitrary"),
            vmem_limit_bytes=vmem_budget,
        ),
    )(x, w)


# ---------------------------------------------------------------------------
# One GCN layer: relu(A_hat @ X @ W + b), association picked by fin vs fout.
# ---------------------------------------------------------------------------
def gcn_layer(a_hat, h, w_pad, b_pad, *, fin, fout, out_dtype, vmem_budget):
    if fin <= fout:
        # Single fused kernel: acc = A @ X over K=N, epilogue relu(acc@W + b).
        return fused_gcn_layer(a_hat, h, w_pad, b_pad,
                               out_dtype=out_dtype, vmem_budget=vmem_budget)
    # Project first (narrower intermediate), then relu(A @ (X@W) + b).
    hp = project_features(h, w_pad, vmem_budget=vmem_budget)
    return fused_gcn_layer(a_hat, hp, None, b_pad,
                           out_dtype=out_dtype, vmem_budget=vmem_budget)


# ---------------------------------------------------------------------------
# Graph preprocessing (plain-JAX glue), matching PyG gcn_norm:
#   - existing self-loop edges are dropped, one self loop added per node
#     (add_remaining_self_loops semantics)
#   - deg over the target index; D^{-1/2} A D^{-1/2}
# Built directly into the padded bf16 buffer (single f32 N^2 temporary).
# ---------------------------------------------------------------------------
def build_normalized_adj_padded(edge_index, num_nodes, n_pad):
    src, dst = edge_index[0], edge_index[1]
    w_e = jnp.where(src != dst, 1.0, 0.0).astype(jnp.float32)   # drop self loops
    counts = jnp.zeros((n_pad, n_pad), jnp.float32).at[dst, src].add(w_e)
    diag = jnp.arange(num_nodes)
    counts = counts.at[diag, diag].add(1.0)                      # add self loops once
    deg = counts.sum(axis=1)                                     # padded rows -> 0
    d_inv_sqrt = jnp.where(deg > 0, jax.lax.rsqrt(deg), 0.0)
    return (d_inv_sqrt[:, None] * counts * d_inv_sqrt[None, :]).astype(jnp.bfloat16)


def init_encoder_params(key, in_channels, out_channels, k):
    """Synthetic weights matching Encoder(__init__) shapes (skip=False):
    in -> 2*out, [2*out -> 2*out] x (k-2), 2*out -> out."""
    dims = [in_channels] + [2 * out_channels] * (k - 1) + [out_channels]
    params = []
    for i in range(k):
        key, kw, kb = jax.random.split(key, 3)
        fan_in, fan_out = dims[i], dims[i + 1]
        w = jax.random.normal(kw, (fan_in, fan_out), jnp.float32) / jnp.sqrt(fan_in)
        b = 0.01 * jax.random.normal(kb, (1, fan_out), jnp.float32)
        params.append((w, b))
    return params


def prepare_params(params):
    """Pad weights/biases once (hoisted out of the layer loop)."""
    prepped = []
    for w, b in params:
        fi, fo = w.shape
        fi_pad, fo_pad = _round_up(fi, LANE), _round_up(fo, LANE)
        w_pad = jnp.zeros((fi_pad, fo_pad), jnp.bfloat16).at[:fi, :fo].set(
            w.astype(jnp.bfloat16))
        b_pad = jnp.zeros((1, fo_pad), jnp.float32).at[:, :fo].set(
            b.astype(jnp.float32))
        prepped.append((w_pad, b_pad, fi, fo))
    return prepped


# ---------------------------------------------------------------------------
# Encoder.forward (skip=False): x = relu(conv_i(x, A_hat)) for each layer.
# Padding is annihilated by A_hat's zero rows/cols and W's zero rows/cols and
# sliced away at the end.
# ---------------------------------------------------------------------------
def encoder_forward(x, edge_index, params):
    n, f_in = x.shape
    n_pad = _round_up(n, ROW_PAD)
    f_pad = _round_up(f_in, LANE)
    vmem_budget = _vmem_budget()

    a_hat = build_normalized_adj_padded(edge_index, n, n_pad)
    h = jnp.zeros((n_pad, f_pad), jnp.bfloat16).at[:n, :f_in].set(
        x.astype(jnp.bfloat16))

    prepped = prepare_params(params)
    num_layers = len(prepped)
    for li, (w_pad, b_pad, fi, fo) in enumerate(prepped):
        last = li == num_layers - 1
        h = gcn_layer(a_hat, h, w_pad, b_pad, fin=fi, fout=fo,
                      out_dtype=jnp.float32 if last else jnp.bfloat16,
                      vmem_budget=vmem_budget)

    f_out = params[-1][0].shape[1]
    return h[:n, :f_out]


# Pure-JAX f32 reference (same math, no padding) for a sanity check.
def encoder_reference(x, edge_index, params):
    n = x.shape[0]
    src, dst = edge_index[0], edge_index[1]
    w_e = jnp.where(src != dst, 1.0, 0.0).astype(jnp.float32)
    a = jnp.zeros((n, n), jnp.float32).at[dst, src].add(w_e)
    a = a + jnp.eye(n, dtype=jnp.float32)
    deg = a.sum(axis=1)
    dis = jnp.where(deg > 0, jax.lax.rsqrt(deg), 0.0)
    a_hat = dis[:, None] * a * dis[None, :]
    h = x
    for w, b in params:
        h = jnp.maximum(a_hat @ h @ w + b, 0.0)
    return h


if __name__ == "__main__":
    key = jax.random.PRNGKey(0)
    k_x, k_src, k_dst, k_params = jax.random.split(key, 4)

    # Small, module-consistent shapes.
    num_nodes = 16
    in_channels = 8
    out_channels = 16
    k_layers = 2
    num_edges = 32

    x = jax.random.normal(k_x, (num_nodes, in_channels), jnp.float32)
    src = jax.random.randint(k_src, (num_edges,), 0, num_nodes)
    dst = jax.random.randint(k_dst, (num_edges,), 0, num_nodes)
    edge_index = jnp.stack([src, dst], axis=0)        # [2, E]

    params = init_encoder_params(k_params, in_channels, out_channels, k_layers)

    out = encoder_forward(x, edge_index, params)      # [num_nodes, out_channels]
    jax.block_until_ready(out)
    assert out.shape == (num_nodes, out_channels)

    ref = encoder_reference(x, edge_index, params)
    err = float(jnp.max(jnp.abs(out - ref)))
    assert err < 0.15, f"max abs error vs f32 reference too large: {err}"

    print("KERNEL_OK")
</pallas_src>

<mosaic_0001>
module attributes {stable_mosaic.version = 11 : i64} {
  func.func @_fused_gcn_kernel(%arg0: i32, %arg1: i32, %arg2: memref<256x256xbf16, #tpu.memory_space<vmem>>, %arg3: memref<256x128xbf16, #tpu.memory_space<vmem>>, %arg4: memref<128x128xbf16, #tpu.memory_space<vmem>>, %arg5: memref<1x128xf32, #tpu.memory_space<vmem>>, %arg6: memref<256x128xbf16, #tpu.memory_space<vmem>>, %arg7: memref<256x128xf32, #tpu.memory_space<vmem>>) attributes {dimension_semantics = [#tpu.dimension_semantics<parallel>, #tpu.dimension_semantics<arbitrary>], iteration_bounds = array<i64: 1, 1>, scalar_prefetch = 0 : i64, scratch_operands = 1 : i64, tpu.core_type = #tpu.core_type<tc>, window_params = [{transform_indices = @transform_0, window_bounds = array<i64: 256, 256>}, {pipeline_mode = #tpu.pipeline_mode<synchronous>, transform_indices = @transform_1, window_bounds = array<i64: 256, 128>}, {pipeline_mode = #tpu.pipeline_mode<synchronous>, transform_indices = @transform_2, window_bounds = array<i64: 128, 128>}, {pipeline_mode = #tpu.pipeline_mode<synchronous>, transform_indices = @transform_3, window_bounds = array<i64: 1, 128>}, {transform_indices = @transform_4, window_bounds = array<i64: 256, 128>}]} {
    %c0_i32 = arith.constant 0 : i32
    %0 = arith.cmpi eq, %arg1, %c0_i32 : i32
    %1 = arith.extui %0 : i1 to i32
    %c0_i32_0 = arith.constant 0 : i32
    %2 = arith.cmpi ne, %1, %c0_i32_0 : i32
    scf.if %2 {
      %cst_9 = arith.constant 0.000000e+00 : f32
      %15 = vector.broadcast %cst_9 : f32 to vector<256x128xf32>
      %c0_10 = arith.constant 0 : index
      %c0_11 = arith.constant 0 : index
      %16 = vector.load %arg7[%c0_10, %c0_11] : memref<256x128xf32, #tpu.memory_space<vmem>>, vector<256x128xf32>
      tpu.vector_store %arg7[%c0_10, %c0_11], %15 {strides = array<i32>} : memref<256x128xf32, #tpu.memory_space<vmem>>, vector<256x128xf32>,
    } else {
    }
    %c256_i32 = arith.constant 256 : i32
    %3 = arith.muli %arg1, %c256_i32 : i32
    %4 = tpu.assume_multiple %3, 128 : i32
    %5 = arith.index_cast %4 : i32 to index
    %c0 = arith.constant 0 : index
    %6 = vector.load %arg3[%5, %c0] : memref<256x128xbf16, #tpu.memory_space<vmem>>, vector<256x128xbf16>
    %c0_1 = arith.constant 0 : index
    %c0_2 = arith.constant 0 : index
    %7 = vector.load %arg7[%c0_1, %c0_2] : memref<256x128xf32, #tpu.memory_space<vmem>>, vector<256x128xf32>
    %c0_3 = arith.constant 0 : index
    %c0_4 = arith.constant 0 : index
    %8 = vector.load %arg2[%c0_3, %c0_4] : memref<256x256xbf16, #tpu.memory_space<vmem>>, vector<256x256xbf16>
    %cst = arith.constant dense<0.000000e+00> : vector<256x128xf32>
    %9 = tpu.matmul %8, %6, %cst {dimension_numbers = #tpu.dot_dimension_numbers<[1], [0], [0], [1], [0, 0, 1, 1], [], []>} : vector<256x256xbf16>, vector<256x128xbf16>, vector<256x128xf32> -> vector<256x128xf32>
    %10 = arith.addf %7, %9 : vector<256x128xf32>
    %c0_5 = arith.constant 0 : index
    %c0_6 = arith.constant 0 : index
    %11 = vector.load %arg7[%c0_5, %c0_6] : memref<256x128xf32, #tpu.memory_space<vmem>>, vector<256x128xf32>
    tpu.vector_store %arg7[%c0_5, %c0_6], %10 {strides = array<i32>} : memref<256x128xf32, #tpu.memory_space<vmem>>, vector<256x128xf32>,
    %c0_i32_7 = arith.constant 0 : i32
    %12 = arith.cmpi eq, %arg1, %c0_i32_7 : i32
    %13 = arith.extui %12 : i1 to i32
    %c0_i32_8 = arith.constant 0 : i32
    %14 = arith.cmpi ne, %13, %c0_i32_8 : i32
    scf.if %14 {
      %c0_9 = arith.constant 0 : index
      %c0_10 = arith.constant 0 : index
      %15 = vector.load %arg7[%c0_9, %c0_10] : memref<256x128xf32, #tpu.memory_space<vmem>>, vector<256x128xf32>
      %16 = arith.truncf %15 : vector<256x128xf32> to vector<256x128xbf16>
      %c0_11 = arith.constant 0 : index
      %c0_12 = arith.constant 0 : index
      %17 = vector.load %arg4[%c0_11, %c0_12] : memref<128x128xbf16, #tpu.memory_space<vmem>>, vector<128x128xbf16>
      %cst_13 = arith.constant dense<0.000000e+00> : vector<256x128xf32>
      %18 = tpu.matmul %16, %17, %cst_13 {dimension_numbers = #tpu.dot_dimension_numbers<[1], [0], [0], [1], [0, 0, 1, 1], [], []>} : vector<256x128xbf16>, vector<128x128xbf16>, vector<256x128xf32> -> vector<256x128xf32>
      %c0_14 = arith.constant 0 : index
      %c0_15 = arith.constant 0 : index
      %19 = vector.load %arg5[%c0_14, %c0_15] : memref<1x128xf32, #tpu.memory_space<vmem>>, vector<1x128xf32>
      %20 = vector.broadcast %19 : vector<1x128xf32> to vector<256x128xf32>
      %21 = arith.addf %18, %20 : vector<256x128xf32>
      %cst_16 = arith.constant 0.000000e+00 : f32
      %22 = vector.broadcast %cst_16 : f32 to vector<256x128xf32>
      %23 = arith.maximumf %21, %22 : vector<256x128xf32>
      %24 = arith.truncf %23 : vector<256x128xf32> to vector<256x128xbf16>
      %c0_17 = arith.constant 0 : index
      %c0_18 = arith.constant 0 : index
      %25 = vector.load %arg6[%c0_17, %c0_18] : memref<256x128xbf16, #tpu.memory_space<vmem>>, vector<256x128xbf16>
      tpu.vector_store %arg6[%c0_17, %c0_18], %24 {strides = array<i32>} : memref<256x128xbf16, #tpu.memory_space<vmem>>, vector<256x128xbf16>,
    } else {
    }
    return
  }
  func.func @transform_0(%arg0: i32, %arg1: i32) -> (i32, i32) {
    %c0_i32 = arith.constant 0 : i32
    return %arg0, %arg1 : i32, i32
  }
  func.func @transform_1(%arg0: i32, %arg1: i32) -> (i32, i32) {
    %c0_i32 = arith.constant 0 : i32
    %c0_i32_0 = arith.constant 0 : i32
    %c0_i32_1 = arith.constant 0 : i32
    return %c0_i32, %c0_i32_0 : i32, i32
  }
  func.func @transform_2(%arg0: i32, %arg1: i32) -> (i32, i32) {
    %c0_i32 = arith.constant 0 : i32
    %c0_i32_0 = arith.constant 0 : i32
    %c0_i32_1 = arith.constant 0 : i32
    return %c0_i32, %c0_i32_0 : i32, i32
  }
  func.func @transform_3(%arg0: i32, %arg1: i32) -> (i32, i32) {
    %c0_i32 = arith.constant 0 : i32
    %c0_i32_0 = arith.constant 0 : i32
    %c0_i32_1 = arith.constant 0 : i32
    return %c0_i32, %c0_i32_0 : i32, i32
  }
  func.func @transform_4(%arg0: i32, %arg1: i32) -> (i32, i32) {
    %c0_i32 = arith.constant 0 : i32
    %c0_i32_0 = arith.constant 0 : i32
    return %arg0, %c0_i32 : i32, i32
  }
}

</mosaic_0001>

<bundles_post_ra>
// kernel: tpu_custom_call.1
= control target key start
LH: loop header
LB: loop body
LE: loop exit
PB: predicated region body
PF: predicated region fallthrough
CT: control target
= control target key end

     0   :  { %9 = vsyncpa [#allocation4], 0  ;;  %s1926_s0 = inlined_call_operand.hbm [shape: bf16[256,256], index: 0, kind: input, shape index: {}]   ;;  %s1927_s1 = inlined_call_operand.hbm [shape: bf16[256,128], index: 1, kind: input, shape index: {}]   ;;  %s1928_s2 = inlined_call_operand.hbm [shape: bf16[128,128], index: 2, kind: input, shape index: {}]   ;;  %s1929_s3 = inlined_call_operand.vmem [shape: f32[1,128], index: 3, kind: input, shape index: {}]   ;;  %s1930_s4 = inlined_call_operand.hbm [shape: bf16[256,128], index: 4, kind: output, shape index: {}]  }
   0x1   :  { %10 = vsyncpa [#allocation7], 0 }
   0x2   :  { %11 = vsyncpa [#allocation5], 0  ;;  %s1763_s15 = smov [#allocation6]   ;;  %s1669_s19 = scalar_lea.hbm %s1927_s1, 2048 }
   0x3   :  { %s29_s16 = sshll.u32 %s1763_s15, 4  ;;  %p1670_p0 = scmp.ne.s32.totalorder %s1927_s1, %s1669_s19  ;;  %s30_s16 = int_to_ptr.vmem [resolvable:$true] %s29_s16 }
   0x4   :  { %p1673_p1 = scmp.lt.u32.totalorder %s1669_s19, %s1927_s1 }
   0x6   :  { %p1675_p2 = pnand %p1673_p1, %p1670_p0 }
   0x8   :  { %1678 = shalt.err (!%p1675_p2)
}
   0x9   :  { %s1679_s24 = scalar_lea.vmem %s30_s16, 2048  ;;  %p1684_p4 = scmp.lt.s32.totalorder %s30_s16, %s30_s16 }
   0xa   :  { %p1680_p3 = scmp.ne.s32.totalorder %s30_s16, %s1679_s24  ;;  %p1685_p5 = scmp.lt.s32.totalorder %s1679_s24, %s1679_s24 }
   0xc   :  { %p1686_p6 = por %p1685_p5, %p1684_p4 }
   0xe   :  { %p1687_p7 = pnand %p1686_p6, %p1680_p3 }
  0x10   :  { %1690 = shalt.err (!%p1687_p7)
}
  0x11   :  { %s1764_s25 = smov 64   ;;  %s1765_s26 = smov 4  }
  0x12   :  { %35 = dma.hbm_to_vmem [thread:$0]  %s1927_s1, 2048, %s30_s16, [#allocation7], %s1764_s25, %s1764_s25, %s1765_s26  }
  0x13   :  { %s1766_s29 = smov [#allocation3]   ;;  %s1691_s7 = scalar_lea.hbm %s1926_s0, 4096 }
  0x14   :  { %s17_s30 = sshll.u32 %s1766_s29, 4  ;;  %p1692_p8 = scmp.ne.s32.totalorder %s1926_s0, %s1691_s7  ;;  %s18_s30 = int_to_ptr.vmem [resolvable:$true] %s17_s30 }
  0x15   :  { %p1695_p9 = scmp.lt.u32.totalorder %s1691_s7, %s1926_s0 }
  0x17   :  { %p1697_p10 = pnand %p1695_p9, %p1692_p8 }
  0x19   :  { %1700 = shalt.err (!%p1697_p10)
}
  0x1a   :  { %s1701_s12 = scalar_lea.vmem %s18_s30, 4096  ;;  %p1706_p12 = scmp.lt.s32.totalorder %s18_s30, %s18_s30 }
  0x1b   :  { %p1702_p11 = scmp.ne.s32.totalorder %s18_s30, %s1701_s12  ;;  %p1707_p13 = scmp.lt.s32.totalorder %s1701_s12, %s1701_s12 }
  0x1d   :  { %p1708_p0 = por %p1707_p13, %p1706_p12 }
  0x1f   :  { %p1709_p1 = pnand %p1708_p0, %p1702_p11 }
  0x21   :  { %1712 = shalt.err (!%p1709_p1)
}
  0x22   :  { %s1767_s1 = smov 128   ;;  %s1768_s13 = smov 8  }
  0x23   :  { %23 = dma.hbm_to_vmem [thread:$0]  %s1926_s0, 4096, %s18_s30, [#allocation4], %s1767_s1, %s1767_s1, %s1768_s13  }
  0x24   :  { %s1769_s16 = smov [#allocation8]   ;;  %s1713_s20 = scalar_lea.hbm %s1928_s2, 1024 }
  0x25   :  { %s41_s17 = sshll.u32 %s1769_s16, 4  ;;  %p1714_p2 = scmp.ne.s32.totalorder %s1928_s2, %s1713_s20  ;;  %s42_s17 = int_to_ptr.vmem [resolvable:$true] %s41_s17 }
  0x26   :  { %p1717_p3 = scmp.lt.u32.totalorder %s1713_s20, %s1928_s2 }
  0x28   :  { %p1719_p4 = pnand %p1717_p3, %p1714_p2 }
  0x2a   :  { %1722 = shalt.err (!%p1719_p4)
}
  0x2b   :  { %s1723_s27 = scalar_lea.vmem %s42_s17, 1024  ;;  %p1728_p6 = scmp.lt.s32.totalorder %s42_s17, %s42_s17 }
  0x2c   :  { %p1724_p5 = scmp.ne.s32.totalorder %s42_s17, %s1723_s27  ;;  %p1729_p7 = scmp.lt.s32.totalorder %s1723_s27, %s1723_s27 }
  0x2e   :  { %p1730_p8 = por %p1729_p7, %p1728_p6 }
  0x30   :  { %p1731_p9 = pnand %p1730_p8, %p1724_p5 }
  0x32   :  { %1734 = shalt.err (!%p1731_p9)
}
  0x33   :  { %47 = dma.hbm_to_vmem [thread:$0]  %s1928_s2, 1024, %s42_s17, [#allocation7], %s1764_s25, %s1764_s25, %s1765_s26  }
  0x34   :  { %1757 = dma.done.wait [#allocation4], 4096  }
  0x35   :  { %1758 = vsyncadd [#allocation4], 4294963200 }
  0x36   :  { %1759 = dma.done.wait [#allocation7], 3072  }
  0x37   :  { %1760 = vsyncadd [#allocation7], 4294964224  ;;  %v1597_v0 = vld [vmem:[#allocation6 + $0x40] sm:$0xff]   ;;  %v1599_v2 = vld [vmem:[#allocation6 + $0x48] sm:$0xff]  }
  0x38   :  { %v1598_v1 = vld [vmem:[#allocation6] sm:$0xff]   ;;  %1389 = vmatprep.subr.bf16.mxu0 %v1597_v0  ;;  %1573 = vmatprep.subr.bf16.mxu1 %v1597_v0  ;;  %v1600_v3 = vld [vmem:[#allocation6 + $0x8] sm:$0xff]   ;;  %v1601_v4 = vld [vmem:[#allocation6 + $0x50] sm:$0xff]  }
  0x39   :  { %1390 = vmatpush3.bf16.msra.mxu0 %v1598_v1  ;;  %1581 = vmatpush3.bf16.msra.mxu1 %v1598_v1  ;;  %v1602_v5 = vld [vmem:[#allocation6 + $0x10] sm:$0xff]   ;;  %v1603_v6 = vld [vmem:[#allocation6 + $0x58] sm:$0xff]   ;;  %v1605_v8 = vld [vmem:[#allocation6 + $0x60] sm:$0xff]  }
  0x3a   :  { %1391 = vmatprep.subr.bf16.mxu0 %v1599_v2  ;;  %1574 = vmatprep.subr.bf16.mxu1 %v1599_v2  ;;  %v1604_v7 = vld [vmem:[#allocation6 + $0x18] sm:$0xff]   ;;  %v1606_v9 = vld [vmem:[#allocation6 + $0x20] sm:$0xff]   ;;  %v1607_v10 = vld [vmem:[#allocation6 + $0x68] sm:$0xff]  }
  0x3b   :  { %v1615_v11 = vld [vmem:[#allocation3 + $0x4] ss:$8 sps:$4 sm:$0xff]   ;;  %v1609_v13 = vld [vmem:[#allocation6 + $0x70] sm:$0xff]   ;;  %v1611_v15 = vld [vmem:[#allocation6 + $0x78] sm:$0xff]  }
  0x3c   :  { %v1608_v12 = vld [vmem:[#allocation6 + $0x28] sm:$0xff]   ;;  %485 = vmatprep.mubr.bf16.mxu0 %v1615_v11  ;;  %v1610_v14 = vld [vmem:[#allocation6 + $0x30] sm:$0xff]   ;;  %v1612_v16 = vld [vmem:[#allocation6 + $0x38] sm:$0xff]  }
  0x3d   :  { %1392 = vmatpush3.bf16.msra.mxu0 %v1600_v3  ;;  %1582 = vmatpush3.bf16.msra.mxu1 %v1600_v3  ;;  %v1613_v17 = vld [vmem:[#allocation3] ss:$8 sps:$4 sm:$0xff]   ;;  %v1645_v18 = vld [vmem:[#allocation3 + $0xc4] ss:$8 sps:$4 sm:$0xff]   ;;  %v1616_v19 = vld [vmem:[#allocation3 + $0x14] ss:$8 sps:$4 sm:$0xff]  }
  0x3e   :  { %1393 = vmatprep.subr.bf16.mxu0 %v1601_v4  ;;  %1575 = vmatprep.subr.bf16.mxu1 %v1601_v4  ;;  %v1643_v20 = vld [vmem:[#allocation3 + $0xc0] ss:$8 sps:$4 sm:$0xff]   ;;  %v1649_v21 = vld [vmem:[#allocation3 + $0xd4] ss:$8 sps:$4 sm:$0xff]   ;;  %v1618_v22 = vld [vmem:[#allocation3 + $0x10] ss:$8 sps:$4 sm:$0xff]  }
  0x3f   :  { %581 = vmatprep.mubr.bf16.mxu1 %v1645_v18  ;;  %v1619_v23 = vld [vmem:[#allocation3 + $0x24] ss:$8 sps:$4 sm:$0xff]   ;;  %v1651_v24 = vld [vmem:[#allocation3 + $0xd0] ss:$8 sps:$4 sm:$0xff]   ;;  %v1621_v29 = vld [vmem:[#allocation3 + $0x20] ss:$8 sps:$4 sm:$0xff]  }
  0x40   :  { %v1661_v25 = vld [vmem:[#allocation8] sm:$0xff]   ;;  %v1662_v26 = vld [vmem:[#allocation8 + $0x8] sm:$0xff]   ;;  %v1663_v28 = vld [vmem:[#allocation8 + $0x10] sm:$0xff]  }
  0x41   :  { %1394 = vmatpush3.bf16.msra.mxu0 %v1602_v5  ;;  %1583 = vmatpush3.bf16.msra.mxu1 %v1602_v5  ;;  %v1655_v27 = vld [vmem:[#allocation3 + $0xe4] ss:$8 sps:$4 sm:$0xff]   ;;  %v1664_v30 = vld [vmem:[#allocation8 + $0x18] sm:$0xff]   ;;  %v1657_v32 = vld [vmem:[#allocation3 + $0xe0] ss:$8 sps:$4 sm:$0xff]  }
  0x42   :  { %1395 = vmatprep.subr.bf16.mxu0 %v1603_v6  ;;  %1576 = vmatprep.subr.bf16.mxu1 %v1603_v6  ;;  %v1622_v31 = vld [vmem:[#allocation3 + $0x34] ss:$8 sps:$4 sm:$0xff]   ;;  %v1624_v34 = vld [vmem:[#allocation3 + $0x30] ss:$8 sps:$4 sm:$0xff]   ;;  %v1625_v35 = vld [vmem:[#allocation3 + $0x44] ss:$8 sps:$4 sm:$0xff]  }
  0x43   :  { %v1658_v33 = vld [vmem:[#allocation3 + $0xf4] ss:$8 sps:$4 sm:$0xff]   ;;  %v1660_v36 = vld [vmem:[#allocation3 + $0xf0] ss:$8 sps:$4 sm:$0xff]   ;;  %v1627_v37 = vld [vmem:[#allocation3 + $0x40] ss:$8 sps:$4 sm:$0xff]  }
  0x44   :  { %v1628_v38 = vld [vmem:[#allocation3 + $0x54] ss:$8 sps:$4 sm:$0xff]   ;;  %v1630_v39 = vld [vmem:[#allocation3 + $0x50] ss:$8 sps:$4 sm:$0xff]   ;;  %v1631_v40 = vld [vmem:[#allocation3 + $0x64] ss:$8 sps:$4 sm:$0xff]  }
  0x45   :  { %1396 = vmatpush3.bf16.msra.mxu0 %v1604_v7  ;;  %1584 = vmatpush3.bf16.msra.mxu1 %v1604_v7  ;;  %v1633_v41 = vld [vmem:[#allocation3 + $0x60] ss:$8 sps:$4 sm:$0xff]   ;;  %v1634_v42 = vld [vmem:[#allocation3 + $0x74] ss:$8 sps:$4 sm:$0xff]   ;;  %v1636_v43 = vld [vmem:[#allocation3 + $0x70] ss:$8 sps:$4 sm:$0xff]  }
  0x46   :  { %1397 = vmatprep.subr.bf16.mxu0 %v1605_v8  ;;  %1577 = vmatprep.subr.bf16.mxu1 %v1605_v8  ;;  %v1637_v44 = vld [vmem:[#allocation3 + $0x84] ss:$8 sps:$4 sm:$0xff]   ;;  %v1639_v45 = vld [vmem:[#allocation3 + $0x80] ss:$8 sps:$4 sm:$0xff]   ;;  %v1640_v46 = vld [vmem:[#allocation3 + $0x94] ss:$8 sps:$4 sm:$0xff]  }
  0x47   :  { %v1642_v47 = vld [vmem:[#allocation3 + $0x90] ss:$8 sps:$4 sm:$0xff]   ;;  %v1646_v48 = vld [vmem:[#allocation3 + $0xa4] ss:$8 sps:$4 sm:$0xff]   ;;  %v1648_v49 = vld [vmem:[#allocation3 + $0xa0] ss:$8 sps:$4 sm:$0xff]  }
  0x48   :  { %v1652_v50 = vld [vmem:[#allocation3 + $0xb4] ss:$8 sps:$4 sm:$0xff]   ;;  %v1665_v51 = vld [vmem:[#allocation8 + $0x20] sm:$0xff]   ;;  %v1654_v52 = vld [vmem:[#allocation3 + $0xb0] ss:$8 sps:$4 sm:$0xff]  }
  0x49   :  { %1398 = vmatpush3.bf16.msra.mxu0 %v1606_v9  ;;  %1585 = vmatpush3.bf16.msra.mxu1 %v1606_v9  ;;  %v1666_v53 = vld [vmem:[#allocation8 + $0x28] sm:$0xff]   ;;  %v1667_v54 = vld [vmem:[#allocation8 + $0x30] sm:$0xff]   ;;  %v1668_v55 = vld [vmem:[#allocation8 + $0x38] sm:$0xff]  }
  0x4a   :  { %1399 = vmatprep.subr.bf16.mxu0 %v1607_v10  ;;  %1578 = vmatprep.subr.bf16.mxu1 %v1607_v10 }
  0x4d   :  { %1400 = vmatpush3.bf16.msra.mxu0 %v1608_v12  ;;  %1586 = vmatpush3.bf16.msra.mxu1 %v1608_v12 }
  0x4e   :  { %1401 = vmatprep.subr.bf16.mxu0 %v1609_v13  ;;  %1579 = vmatprep.subr.bf16.mxu1 %v1609_v13 }
  0x51   :  { %1402 = vmatpush3.bf16.msra.mxu0 %v1610_v14  ;;  %1587 = vmatpush3.bf16.msra.mxu1 %v1610_v14 }
  0x52   :  { %1403 = vmatprep.subr.bf16.mxu0 %v1611_v15  ;;  %1580 = vmatprep.subr.bf16.mxu1 %v1611_v15 }
  0x55   :  { %1404 = vmatpush3.bf16.msra.mxu0 %v1612_v16  ;;  %1588 = vmatpush3.bf16.msra.mxu1 %v1612_v16 }
  0x56   :  { %1525 = vmatprep.subr.bf16.mxu1 %v1661_v25 }
  0x58   :  { %486 = vmatmul.mubr.bf16.vlgmr.msra.gmra.mrb[0].mxu0 %v1613_v17  ;;  %582 = vmatmul.mubr.bf16.vlgmr.msra.gmra.mrb[0].mxu1 %v1643_v20 }
  0x59   :  { %493 = vmatprep.mubr.bf16.mxu0 %v1616_v19  ;;  %589 = vmatprep.mubr.bf16.mxu1 %v1649_v21 }
  0x5a   :  { %1526 = vmatpush3.bf16.msra.mxu1 %v1661_v25 }
  0x5b   :  { %1527 = vmatprep.subr.bf16.mxu1 %v1662_v26 }
  0x5e   :  { %1528 = vmatpush3.bf16.msra.mxu1 %v1662_v26 }
  0x5f   :  { %1529 = vmatprep.subr.bf16.mxu1 %v1663_v28 }
  0x60   :  { %494 = vmatmul.mubr.bf16.gmra.mrb[4].mxu0 %v1618_v22  ;;  %590 = vmatmul.mubr.bf16.gmra.mrb[4].mxu1 %v1651_v24 }
  0x61   :  { %501 = vmatprep.mubr.bf16.mxu0 %v1619_v23  ;;  %597 = vmatprep.mubr.bf16.mxu1 %v1655_v27 }
  0x62   :  { %1530 = vmatpush3.bf16.msra.mxu1 %v1663_v28 }
  0x63   :  { %1531 = vmatprep.subr.bf16.mxu1 %v1664_v30 }
  0x66   :  { %1532 = vmatpush3.bf16.msra.mxu1 %v1664_v30 }
  0x67   :  { %1533 = vmatprep.subr.bf16.mxu1 %v1665_v51 }
  0x68   :  { %502 = vmatmul.mubr.bf16.gmra.mrb[8].mxu0 %v1621_v29  ;;  %598 = vmatmul.mubr.bf16.gmra.mrb[8].mxu1 %v1657_v32 }
  0x69   :  { %509 = vmatprep.mubr.bf16.mxu0 %v1622_v31  ;;  %605 = vmatprep.mubr.bf16.mxu1 %v1658_v33 }
  0x6a   :  { %1534 = vmatpush3.bf16.msra.mxu1 %v1665_v51 }
  0x6b   :  { %1535 = vmatprep.subr.bf16.mxu1 %v1666_v53 }
  0x6e   :  { %1536 = vmatpush3.bf16.msra.mxu1 %v1666_v53 }
  0x6f   :  { %1537 = vmatprep.subr.bf16.mxu1 %v1667_v54 }
  0x70   :  { %510 = vmatmul.mubr.bf16.gmra.mrb[12].mxu0 %v1624_v34  ;;  %606 = vmatmul.mubr.bf16.gmra.mrb[12].mxu1 %v1660_v36 }
  0x71   :  { %517 = vmatprep.mubr.bf16.mxu0 %v1625_v35 }
  0x72   :  { %1538 = vmatpush3.bf16.msra.mxu1 %v1667_v54 }
  0x73   :  { %1539 = vmatprep.subr.bf16.mxu1 %v1668_v55 }
  0x76   :  { %1540 = vmatpush3.bf16.msra.mxu1 %v1668_v55 }
  0x78   :  { %518 = vmatmul.mubr.bf16.gmra.mrb[16].mxu0 %v1627_v37 }
  0x79   :  { %525 = vmatprep.mubr.bf16.mxu0 %v1628_v38 }
  0x80   :  { %526 = vmatmul.mubr.bf16.gmra.mrb[20].mxu0 %v1630_v39 }
  0x81   :  { %533 = vmatprep.mubr.bf16.mxu0 %v1631_v40 }
  0x88   :  { %534 = vmatmul.mubr.bf16.gmra.mrb[24].mxu0 %v1633_v41 }
  0x89   :  { %541 = vmatprep.mubr.bf16.mxu0 %v1634_v42 }
  0x90   :  { %542 = vmatmul.mubr.bf16.gmra.mrb[28].mxu0 %v1636_v43 }
  0x91   :  { %549 = vmatprep.mubr.bf16.mxu0 %v1637_v44 }
  0x98   :  { %550 = vmatmul.mubr.bf16.gmra.mrb[32].mxu0 %v1639_v45 }
  0x99   :  { %557 = vmatprep.mubr.bf16.mxu0 %v1640_v46 }
  0xa0   :  { %558 = vmatmul.mubr.bf16.gmra.mrb[36].mxu0 %v1642_v47 }
  0xa1   :  { %565 = vmatprep.mubr.bf16.mxu0 %v1646_v48 }
  0xa8   :  { %566 = vmatmul.mubr.bf16.gmra.mrb[40].mxu0 %v1648_v49 }
  0xa9   :  { %573 = vmatprep.mubr.bf16.mxu0 %v1652_v50 }
  0xb0   :  { %574 = vmatmul.mubr.bf16.gmra.mrb[44].mxu0 %v1654_v52 }
 0x12b   :  { %v1405_v56 = vpop.f32.mrb[0].mxu0  ;;  %v1477_v58 = vpop.f32.mrb[0].mxu1 }
 0x12c   :  { %v1406_v57 = vpop.f32.mrb[1].mxu0  ;;  %v1478_v61 = vpop.f32.mrb[1].mxu1 }
 0x12d   :  { %v1407_v59 = vadd.f32 %v1406_v57, %v1405_v56  ;;  %v1408_v60 = vpop.f32.mrb[2].mxu0  ;;  %v1838_v63 = vadd.f32 %v1478_v61, %v1477_v58  ;;  %v1480_v0 = vpop.f32.mrb[2].mxu1 }
 0x12e   :  { %v1409_v62 = vpop.f32.mrb[3].mxu0  ;;  %v1481_v2 = vpop.f32.mrb[3].mxu1 }
 0x12f   :  { %v1410_v1 = vadd.f32 %v1409_v62, %v1408_v60  ;;  %v1840_v3 = vadd.f32 %v1481_v2, %v1480_v0 }
 0x131   :  { %v713_v4 = vpack.c.bf16 %v1410_v1, %v1407_v59  ;;  %v725_v5 = vpack.c.bf16 %v1840_v3, %v1838_v63 }
 0x133   :  { %v1411_v6 = vpop.f32.mrb[4].mxu0  ;;  %1541 = vmatprep.mubr.bf16.mxu1 %v713_v4  ;;  %v1483_v8 = vpop.f32.mrb[4].mxu1 }
 0x134   :  { %v1412_v7 = vpop.f32.mrb[5].mxu0  ;;  %v1484_v11 = vpop.f32.mrb[5].mxu1 }
 0x135   :  { %v1413_v9 = vadd.f32 %v1412_v7, %v1411_v6  ;;  %v1414_v10 = vpop.f32.mrb[6].mxu0  ;;  %v1844_v13 = vadd.f32 %v1484_v11, %v1483_v8  ;;  %v1486_v14 = vpop.f32.mrb[6].mxu1 }
 0x136   :  { %v1415_v12 = vpop.f32.mrb[7].mxu0  ;;  %v1487_v16 = vpop.f32.mrb[7].mxu1 }
 0x137   :  { %v1416_v15 = vadd.f32 %v1415_v12, %v1414_v10  ;;  %v1846_v17 = vadd.f32 %v1487_v16, %v1486_v14 }
 0x139   :  { %v714_v18 = vpack.c.bf16 %v1416_v15, %v1413_v9  ;;  %v726_v19 = vpack.c.bf16 %v1846_v17, %v1844_v13 }
 0x13b   :  { %v1417_v20 = vpop.f32.mrb[8].mxu0  ;;  %1542 = vmatmul.mubr.bf16.vlgmr.msra.gmra.mrb[16].mxu1 %v714_v18  ;;  %v1489_v22 = vpop.f32.mrb[8].mxu1 }
 0x13c   :  { %v1418_v21 = vpop.f32.mrb[9].mxu0  ;;  %v1490_v25 = vpop.f32.mrb[9].mxu1 }
 0x13d   :  { %v1419_v23 = vadd.f32 %v1418_v21, %v1417_v20  ;;  %v1420_v24 = vpop.f32.mrb[10].mxu0  ;;  %v1850_v27 = vadd.f32 %v1490_v25, %v1489_v22  ;;  %v1492_v28 = vpop.f32.mrb[10].mxu1 }
 0x13e   :  { %v1421_v26 = vpop.f32.mrb[11].mxu0  ;;  %v1493_v30 = vpop.f32.mrb[11].mxu1 }
 0x13f   :  { %v1422_v29 = vadd.f32 %v1421_v26, %v1420_v24  ;;  %v1852_v31 = vadd.f32 %v1493_v30, %v1492_v28 }
 0x141   :  { %v715_v32 = vpack.c.bf16 %v1422_v29, %v1419_v23  ;;  %v727_v33 = vpack.c.bf16 %v1852_v31, %v1850_v27 }
 0x143   :  { %v1423_v34 = vpop.f32.mrb[12].mxu0  ;;  %1545 = vmatprep.mubr.bf16.mxu1 %v715_v32  ;;  %v1495_v36 = vpop.f32.mrb[12].mxu1 }
 0x144   :  { %v1424_v35 = vpop.f32.mrb[13].mxu0  ;;  %v1496_v39 = vpop.f32.mrb[13].mxu1 }
 0x145   :  { %v1425_v37 = vadd.f32 %v1424_v35, %v1423_v34  ;;  %v1426_v38 = vpop.f32.mrb[14].mxu0  ;;  %v1856_v41 = vadd.f32 %v1496_v39, %v1495_v36  ;;  %v1498_v42 = vpop.f32.mrb[14].mxu1 }
 0x146   :  { %v1427_v40 = vpop.f32.mrb[15].mxu0  ;;  %v1499_v44 = vpop.f32.mrb[15].mxu1 }
 0x147   :  { %v1428_v43 = vadd.f32 %v1427_v40, %v1426_v38  ;;  %v1858_v45 = vadd.f32 %v1499_v44, %v1498_v42 }
 0x149   :  { %v716_v46 = vpack.c.bf16 %v1428_v43, %v1425_v37  ;;  %v728_v47 = vpack.c.bf16 %v1858_v45, %v1856_v41 }
 0x14b   :  { %v1429_v48 = vpop.f32.mrb[16].mxu0  ;;  %1546 = vmatmul.mubr.bf16.gmra.mrb[20].mxu1 %v716_v46 }
 0x14c   :  { %v1430_v49 = vpop.f32.mrb[17].mxu0 }
 0x14d   :  { %v1431_v50 = vadd.f32 %v1430_v49, %v1429_v48  ;;  %v1432_v51 = vpop.f32.mrb[18].mxu0 }
 0x14e   :  { %v1433_v52 = vpop.f32.mrb[19].mxu0 }
 0x14f   :  { %v1434_v53 = vadd.f32 %v1433_v52, %v1432_v51  ;;  %v1877_v52 = vld [vmem:[%s1929_s3] ss:$0 sm:$0xff]  ;;  %s1770_s3 = smov [#allocation9]  }
 0x150   :  { %s1158_s30 = sshll.u32 %s1770_s3, 4  ;;  %s1159_s30 = int_to_ptr.vmem [resolvable:$true] %s1158_s30 }
 0x151   :  { %v717_v54 = vpack.c.bf16 %v1434_v53, %v1431_v50  ;;  %s1735_s5 = scalar_lea.vmem %s1159_s30, 2048  ;;  %p1740_p11 = scmp.lt.s32.totalorder %s1159_s30, %s1159_s30 }
 0x152   :  { %p1736_p10 = scmp.ne.s32.totalorder %s1159_s30, %s1735_s5  ;;  %p1741_p12 = scmp.lt.s32.totalorder %s1735_s5, %s1735_s5 }
 0x153   :  { %v1435_v55 = vpop.f32.mrb[20].mxu0  ;;  %1549 = vmatprep.mubr.bf16.mxu1 %v717_v54 }
 0x154   :  { %v1436_v56 = vpop.f32.mrb[21].mxu0  ;;  %p1742_p13 = por %p1741_p12, %p1740_p11 }
 0x155   :  { %v1437_v57 = vadd.f32 %v1436_v56, %v1435_v55  ;;  %v1438_v58 = vpop.f32.mrb[22].mxu0 }
 0x156   :  { %v1439_v59 = vpop.f32.mrb[23].mxu0  ;;  %p1743_p0 = pnand %p1742_p13, %p1736_p10 }
 0x157   :  { %v1440_v60 = vadd.f32 %v1439_v59, %v1438_v58 }
 0x159   :  { %v718_v61 = vpack.c.bf16 %v1440_v60, %v1437_v57 }
 0x15b   :  { %v1441_v62 = vpop.f32.mrb[24].mxu0  ;;  %1550 = vmatmul.mubr.bf16.gmra.mrb[24].mxu1 %v718_v61 }
 0x15c   :  { %v1442_v0 = vpop.f32.mrb[25].mxu0 }
 0x15d   :  { %v1443_v1 = vadd.f32 %v1442_v0, %v1441_v62  ;;  %v1444_v2 = vpop.f32.mrb[26].mxu0 }
 0x15e   :  { %v1445_v4 = vpop.f32.mrb[27].mxu0 }
 0x15f   :  { %v1446_v6 = vadd.f32 %v1445_v4, %v1444_v2 }
 0x161   :  { %v719_v7 = vpack.c.bf16 %v1446_v6, %v1443_v1 }
 0x163   :  { %v1447_v8 = vpop.f32.mrb[28].mxu0  ;;  %1553 = vmatprep.mubr.bf16.mxu1 %v719_v7 }
 0x164   :  { %v1448_v9 = vpop.f32.mrb[29].mxu0 }
 0x165   :  { %v1449_v10 = vadd.f32 %v1448_v9, %v1447_v8  ;;  %v1450_v11 = vpop.f32.mrb[30].mxu0 }
 0x166   :  { %v1451_v12 = vpop.f32.mrb[31].mxu0 }
 0x167   :  { %v1452_v14 = vadd.f32 %v1451_v12, %v1450_v11 }
 0x169   :  { %v720_v15 = vpack.c.bf16 %v1452_v14, %v1449_v10 }
 0x16b   :  { %v1453_v16 = vpop.f32.mrb[32].mxu0  ;;  %1554 = vmatmul.mubr.bf16.gmra.mrb[28].mxu1 %v720_v15 }
 0x16c   :  { %v1454_v18 = vpop.f32.mrb[33].mxu0 }
 0x16d   :  { %v1455_v20 = vadd.f32 %v1454_v18, %v1453_v16  ;;  %v1456_v21 = vpop.f32.mrb[34].mxu0 }
 0x16e   :  { %v1457_v22 = vpop.f32.mrb[35].mxu0 }
 0x16f   :  { %v1458_v23 = vadd.f32 %v1457_v22, %v1456_v21 }
 0x171   :  { %v721_v24 = vpack.c.bf16 %v1458_v23, %v1455_v20 }
 0x173   :  { %v1459_v25 = vpop.f32.mrb[36].mxu0  ;;  %1557 = vmatprep.mubr.bf16.mxu1 %v721_v24 }
 0x174   :  { %v1460_v26 = vpop.f32.mrb[37].mxu0 }
 0x175   :  { %v1461_v28 = vadd.f32 %v1460_v26, %v1459_v25  ;;  %v1462_v29 = vpop.f32.mrb[38].mxu0 }
 0x176   :  { %v1463_v30 = vpop.f32.mrb[39].mxu0 }
 0x177   :  { %v1464_v32 = vadd.f32 %v1463_v30, %v1462_v29 }
 0x179   :  { %v722_v34 = vpack.c.bf16 %v1464_v32, %v1461_v28 }
 0x17b   :  { %v1465_v35 = vpop.f32.mrb[40].mxu0  ;;  %1558 = vmatmul.mubr.bf16.gmra.mrb[32].mxu1 %v722_v34 }
 0x17c   :  { %v1466_v36 = vpop.f32.mrb[41].mxu0 }
 0x17d   :  { %v1467_v37 = vadd.f32 %v1466_v36, %v1465_v35  ;;  %v1468_v38 = vpop.f32.mrb[42].mxu0 }
 0x17e   :  { %v1469_v39 = vpop.f32.mrb[43].mxu0 }
 0x17f   :  { %v1470_v40 = vadd.f32 %v1469_v39, %v1468_v38 }
 0x181   :  { %v723_v42 = vpack.c.bf16 %v1470_v40, %v1467_v37 }
 0x183   :  { %v1471_v43 = vpop.f32.mrb[44].mxu0  ;;  %1561 = vmatprep.mubr.bf16.mxu1 %v723_v42 }
 0x184   :  { %v1472_v44 = vpop.f32.mrb[45].mxu0 }
 0x185   :  { %v1473_v46 = vadd.f32 %v1472_v44, %v1471_v43  ;;  %v1474_v48 = vpop.f32.mrb[46].mxu0 }
 0x186   :  { %v1475_v49 = vpop.f32.mrb[47].mxu0 }
 0x187   :  { %v1476_v50 = vadd.f32 %v1475_v49, %v1474_v48 }
 0x189   :  { %v724_v51 = vpack.c.bf16 %v1476_v50, %v1473_v46 }
 0x18b   :  { %1562 = vmatmul.mubr.bf16.gmra.mrb[36].mxu1 %v724_v51 }
 0x18c   :  { %1565 = vmatprep.mubr.bf16.mxu1 %v725_v5 }
 0x193   :  { %1566 = vmatmul.mubr.bf16.gmra.mrb[40].mxu1 %v726_v19 }
 0x194   :  { %1569 = vmatprep.mubr.bf16.mxu1 %v727_v33 }
 0x19b   :  { %1570 = vmatmul.mubr.bf16.gmra.mrb[44].mxu1 %v728_v47 }
 0x20e   :  { %v1543_v53 = vpop.f32.mrb[16].mxu1 }
 0x20f   :  { %v843_v63 = vadd.f32 %v1543_v53, %v1877_v52  ;;  %v834_v3 = vpop.f32.mrb[17].mxu1 }
 0x210   :  { %v835_v5 = vadd.f32 %v1877_v52, %v834_v3  ;;  %v1544_v13 = vpop.f32.mrb[18].mxu1 }
 0x211   :  { %v846_v17 = vadd.f32 %v1544_v13, %v1877_v52  ;;  %v837_v19 = vpop.f32.mrb[19].mxu1  ;;  %v963_v31 = vmax.f32 %v843_v63, 0.0 }
 0x212   :  { %v838_v27 = vadd.f32 %v1877_v52, %v837_v19  ;;  %v961_v41 = vmax.f32 %v835_v5, 0.0 }
 0x213   :  { %v964_v33 = vmax.f32 %v846_v17, 0.0 }
 0x214   :  { %v962_v45 = vmax.f32 %v838_v27, 0.0 }
 0x215   :  { %v1302_v47 = vpack.c.bf16 %v964_v33, %v963_v31 }
 0x216   :  { %v1297_v54 = vpack.c.bf16 %v962_v45, %v961_v41 }
 0x217   :  { %1374 = vst [vmem:[#allocation9 + $0x8] sm:$0xff] %v1302_v47  }
 0x218   :  { %1298 = vst [vmem:[#allocation9] sm:$0xff] %v1297_v54  }
 0x21e   :  { %v1547_v55 = vpop.f32.mrb[20].mxu1 }
 0x21f   :  { %v859_v56 = vadd.f32 %v1547_v55, %v1877_v52  ;;  %v850_v57 = vpop.f32.mrb[21].mxu1 }
 0x220   :  { %v851_v58 = vadd.f32 %v1877_v52, %v850_v57  ;;  %v1548_v59 = vpop.f32.mrb[22].mxu1 }
 0x221   :  { %v862_v60 = vadd.f32 %v1548_v59, %v1877_v52  ;;  %v853_v61 = vpop.f32.mrb[23].mxu1  ;;  %v967_v0 = vmax.f32 %v859_v56, 0.0 }
 0x222   :  { %v854_v62 = vadd.f32 %v1877_v52, %v853_v61  ;;  %v965_v2 = vmax.f32 %v851_v58, 0.0 }
 0x223   :  { %v968_v1 = vmax.f32 %v862_v60, 0.0 }
 0x224   :  { %v966_v4 = vmax.f32 %v854_v62, 0.0 }
 0x225   :  { %v1312_v6 = vpack.c.bf16 %v968_v1, %v967_v0 }
 0x226   :  { %v1307_v7 = vpack.c.bf16 %v966_v4, %v965_v2 }
 0x227   :  { %1376 = vst [vmem:[#allocation9 + $0x18] sm:$0xff] %v1312_v6  }
 0x228   :  { %1375 = vst [vmem:[#allocation9 + $0x10] sm:$0xff] %v1307_v7  }
 0x22e   :  { %v1551_v8 = vpop.f32.mrb[24].mxu1 }
 0x22f   :  { %v875_v9 = vadd.f32 %v1551_v8, %v1877_v52  ;;  %v866_v10 = vpop.f32.mrb[25].mxu1 }
 0x230   :  { %v867_v11 = vadd.f32 %v1877_v52, %v866_v10  ;;  %v1552_v12 = vpop.f32.mrb[26].mxu1 }
 0x231   :  { %v878_v14 = vadd.f32 %v1552_v12, %v1877_v52  ;;  %v869_v15 = vpop.f32.mrb[27].mxu1  ;;  %v971_v18 = vmax.f32 %v875_v9, 0.0 }
 0x232   :  { %v870_v16 = vadd.f32 %v1877_v52, %v869_v15  ;;  %v969_v21 = vmax.f32 %v867_v11, 0.0 }
 0x233   :  { %v972_v20 = vmax.f32 %v878_v14, 0.0 }
 0x234   :  { %v970_v22 = vmax.f32 %v870_v16, 0.0 }
 0x235   :  { %v1322_v23 = vpack.c.bf16 %v972_v20, %v971_v18 }
 0x236   :  { %v1317_v24 = vpack.c.bf16 %v970_v22, %v969_v21 }
 0x237   :  { %1378 = vst [vmem:[#allocation9 + $0x28] sm:$0xff] %v1322_v23  }
 0x238   :  { %1377 = vst [vmem:[#allocation9 + $0x20] sm:$0xff] %v1317_v24  }
 0x23e   :  { %v1555_v25 = vpop.f32.mrb[28].mxu1 }
 0x23f   :  { %v891_v26 = vadd.f32 %v1555_v25, %v1877_v52  ;;  %v882_v28 = vpop.f32.mrb[29].mxu1 }
 0x240   :  { %v883_v29 = vadd.f32 %v1877_v52, %v882_v28  ;;  %v1556_v30 = vpop.f32.mrb[30].mxu1 }
 0x241   :  { %v894_v32 = vadd.f32 %v1556_v30, %v1877_v52  ;;  %v885_v34 = vpop.f32.mrb[31].mxu1  ;;  %v975_v36 = vmax.f32 %v891_v26, 0.0 }
 0x242   :  { %v886_v35 = vadd.f32 %v1877_v52, %v885_v34  ;;  %v973_v38 = vmax.f32 %v883_v29, 0.0 }
 0x243   :  { %v976_v37 = vmax.f32 %v894_v32, 0.0 }
 0x244   :  { %v974_v39 = vmax.f32 %v886_v35, 0.0 }
 0x245   :  { %v1332_v40 = vpack.c.bf16 %v976_v37, %v975_v36 }
 0x246   :  { %v1327_v42 = vpack.c.bf16 %v974_v39, %v973_v38 }
 0x247   :  { %1380 = vst [vmem:[#allocation9 + $0x38] sm:$0xff] %v1332_v40  }
 0x248   :  { %1379 = vst [vmem:[#allocation9 + $0x30] sm:$0xff] %v1327_v42  }
 0x24e   :  { %v1559_v43 = vpop.f32.mrb[32].mxu1 }
 0x24f   :  { %v907_v44 = vadd.f32 %v1559_v43, %v1877_v52  ;;  %v898_v46 = vpop.f32.mrb[33].mxu1 }
 0x250   :  { %v899_v48 = vadd.f32 %v1877_v52, %v898_v46  ;;  %v1560_v49 = vpop.f32.mrb[34].mxu1 }
 0x251   :  { %v910_v50 = vadd.f32 %v1560_v49, %v1877_v52  ;;  %v901_v51 = vpop.f32.mrb[35].mxu1  ;;  %v979_v63 = vmax.f32 %v907_v44, 0.0 }
 0x252   :  { %v902_v53 = vadd.f32 %v1877_v52, %v901_v51  ;;  %v977_v5 = vmax.f32 %v899_v48, 0.0 }
 0x253   :  { %v980_v3 = vmax.f32 %v910_v50, 0.0 }
 0x254   :  { %v978_v13 = vmax.f32 %v902_v53, 0.0 }
 0x255   :  { %v1342_v17 = vpack.c.bf16 %v980_v3, %v979_v63 }
 0x256   :  { %v1337_v19 = vpack.c.bf16 %v978_v13, %v977_v5 }
 0x257   :  { %1382 = vst [vmem:[#allocation9 + $0x48] sm:$0xff] %v1342_v17  }
 0x258   :  { %1381 = vst [vmem:[#allocation9 + $0x40] sm:$0xff] %v1337_v19  }
 0x25e   :  { %v1563_v27 = vpop.f32.mrb[36].mxu1 }
 0x25f   :  { %v923_v31 = vadd.f32 %v1563_v27, %v1877_v52  ;;  %v914_v33 = vpop.f32.mrb[37].mxu1 }
 0x260   :  { %v915_v41 = vadd.f32 %v1877_v52, %v914_v33  ;;  %v1564_v45 = vpop.f32.mrb[38].mxu1 }
 0x261   :  { %v926_v47 = vadd.f32 %v1564_v45, %v1877_v52  ;;  %v917_v54 = vpop.f32.mrb[39].mxu1  ;;  %v983_v56 = vmax.f32 %v923_v31, 0.0 }
 0x262   :  { %v918_v55 = vadd.f32 %v1877_v52, %v917_v54  ;;  %v981_v58 = vmax.f32 %v915_v41, 0.0 }
 0x263   :  { %v984_v57 = vmax.f32 %v926_v47, 0.0 }
 0x264   :  { %v982_v59 = vmax.f32 %v918_v55, 0.0 }
 0x265   :  { %v1352_v60 = vpack.c.bf16 %v984_v57, %v983_v56 }
 0x266   :  { %v1347_v61 = vpack.c.bf16 %v982_v59, %v981_v58  ;;  %v1567_v62 = vpop.f32.mrb[40].mxu1 }
 0x267   :  { %1384 = vst [vmem:[#allocation9 + $0x58] sm:$0xff] %v1352_v60   ;;  %v939_v0 = vadd.f32 %v1567_v62, %v1877_v52  ;;  %v930_v1 = vpop.f32.mrb[41].mxu1 }
 0x268   :  { %1383 = vst [vmem:[#allocation9 + $0x50] sm:$0xff] %v1347_v61   ;;  %v931_v2 = vadd.f32 %v1877_v52, %v930_v1  ;;  %v1568_v4 = vpop.f32.mrb[42].mxu1 }
 0x269   :  { %v942_v6 = vadd.f32 %v1568_v4, %v1877_v52  ;;  %v933_v7 = vpop.f32.mrb[43].mxu1  ;;  %v987_v9 = vmax.f32 %v939_v0, 0.0 }
 0x26a   :  { %v934_v8 = vadd.f32 %v1877_v52, %v933_v7  ;;  %v985_v11 = vmax.f32 %v931_v2, 0.0 }
 0x26b   :  { %v988_v10 = vmax.f32 %v942_v6, 0.0 }
 0x26c   :  { %v986_v12 = vmax.f32 %v934_v8, 0.0 }
 0x26d   :  { %v1362_v14 = vpack.c.bf16 %v988_v10, %v987_v9 }
 0x26e   :  { %v1357_v15 = vpack.c.bf16 %v986_v12, %v985_v11  ;;  %v1571_v16 = vpop.f32.mrb[44].mxu1 }
 0x26f   :  { %1386 = vst [vmem:[#allocation9 + $0x68] sm:$0xff] %v1362_v14   ;;  %v955_v18 = vadd.f32 %v1571_v16, %v1877_v52  ;;  %v946_v20 = vpop.f32.mrb[45].mxu1 }
 0x270   :  { %1385 = vst [vmem:[#allocation9 + $0x60] sm:$0xff] %v1357_v15   ;;  %v947_v21 = vadd.f32 %v1877_v52, %v946_v20  ;;  %v1572_v22 = vpop.f32.mrb[46].mxu1 }
 0x271   :  { %v958_v23 = vadd.f32 %v1572_v22, %v1877_v52  ;;  %v949_v24 = vpop.f32.mrb[47].mxu1  ;;  %v991_v26 = vmax.f32 %v955_v18, 0.0 }
 0x272   :  { %v950_v25 = vadd.f32 %v1877_v52, %v949_v24  ;;  %v989_v29 = vmax.f32 %v947_v21, 0.0 }
 0x273   :  { %v992_v28 = vmax.f32 %v958_v23, 0.0 }
 0x274   :  { %v990_v30 = vmax.f32 %v950_v25, 0.0 }
 0x275   :  { %v1372_v32 = vpack.c.bf16 %v992_v28, %v991_v26 }
 0x276   :  { %v1367_v34 = vpack.c.bf16 %v990_v30, %v989_v29 }
 0x277   :  { %1388 = vst [vmem:[#allocation9 + $0x78] sm:$0xff] %v1372_v32  }
 0x278   :  { %1387 = vst [vmem:[#allocation9 + $0x70] sm:$0xff] %v1367_v34  }
 0x279   :  { %1746 = shalt.err (!%p1743_p0)
}
 0x27a   :  { %s1747_s8 = scalar_lea.hbm %s1930_s4, 2048 }
 0x27b   :  { %p1748_p1 = scmp.ne.s32.totalorder %s1930_s4, %s1747_s8  ;;  %p1751_p2 = scmp.lt.u32.totalorder %s1747_s8, %s1930_s4 }
 0x27d   :  { %p1753_p3 = pnand %p1751_p2, %p1748_p1 }
 0x27f   :  { %1756 = shalt.err (!%p1753_p3)
}
 0x280   :  { %1164 = dma.vmem_to_hbm [thread:$0]  %s1159_s30, 2048, %s1930_s4, [#allocation5], %s1764_s25, %s1764_s25, %s1765_s26  }
 0x281   :  { %1761 = dma.done.wait [#allocation5], 2048  }
 0x282   :  { %1762 = vsyncadd [#allocation5], 4294965248 }
 0x283   :  { %1168 = vsyncpa [#allocation4], 1 }
 0x284   :  { %1169 = vsyncpa [#allocation7], 1 }
 0x285   :  { %1170 = vsyncpa [#allocation5], 1 }

</bundles_post_ra>
